<compile_context>
chip_gen: v6e
topology: v6e:2x2x1
jax: 0.10.0
libtpu: 0.0.40
codegen_flags: <defaults>
</compile_context>

<pallas_src>
import functools
from math import sqrt

import jax
import jax.numpy as jnp
import numpy as np
from jax import lax
from jax.experimental import pallas as pl
from jax.experimental.pallas import tpu as pltpu


# --------------------------------------------------------------------------------------
# Kernel 1: batch-invariant masked softmax over the learned scores parameter.
#   scores_param : (1, H, L, S)  block (1, 1, L, S)   grid = (H,)
#   A out        : (H, L, S)     block (1, L, S)
# --------------------------------------------------------------------------------------
def _softmax_kernel(scores_ref, a_ref, *, scale, mask_flag):
    s = scores_ref[0, 0].astype(jnp.float32)          # (L, S)
    L, S = s.shape

    s = s * jnp.float32(scale)
    if mask_flag:
        # TriangularCausalMask: positions s > l are masked with -inf.
        # (Equivalent to torch's mask-then-scale since scale > 0.)
        row = lax.broadcasted_iota(jnp.int32, (L, S), 0)
        col = lax.broadcasted_iota(jnp.int32, (L, S), 1)
        s = jnp.where(col > row, jnp.float32(-jnp.inf), s)

    # numerically-stable softmax over the last dim; divide goes to the EUP slot.
    m = jnp.max(s, axis=-1, keepdims=True)
    e = jnp.exp(s - m)
    denom = jnp.sum(e, axis=-1, keepdims=True)
    a_ref[0] = (e * pl.reciprocal(denom, approx=True)).astype(a_ref.dtype)


# --------------------------------------------------------------------------------------
# Kernel 2: V[b, l, (h,d)] = sum_s A[h, l, s] * values[b, s, (h,d)]
#   A       : (H, L, S)      block (H, L, S)      constant index -> fetched once
#   values  : (B, S, H*D)    block (1, S, H*D)    grid = (B,)
#   out     : (B, L, H*D)    block (1, L, H*D)    lane-dense store
# --------------------------------------------------------------------------------------
def _av_kernel(a_ref, v_ref, o_ref, *, H, D):
    v = v_ref[0]                                       # (S, H*D)
    outs = []
    for h in range(H):                                 # H is small & static (unrolled)
        a_h = a_ref[h]                                 # (L, S)
        v_h = v[:, h * D:(h + 1) * D]                  # (S, D)
        outs.append(jnp.dot(a_h, v_h, preferred_element_type=jnp.float32))
    # single lane-dense (L, H*D) store instead of H narrow (L, D) partial stores
    o_ref[0] = jnp.concatenate(outs, axis=-1).astype(o_ref.dtype)


def _vmem_limit(bytes_est):
    # Leave the chip-default scoped-VMEM limit alone for small working sets; only
    # raise it (with headroom, capped below v7x's 64 MiB physical VMEM) when needed.
    if bytes_est <= 12 * 1024 * 1024:
        return None
    return min(int(bytes_est * 1.5), 60 * 1024 * 1024)


@functools.partial(jax.jit,
                   static_argnames=("E", "scale", "mask_flag", "output_attention"))
def static_attention(values, scores_param, *, E, scale=None, mask_flag=True,
                     output_attention=False):
    """values: (B, S, H, D) f32; scores_param: (1, H, L, S) f32.

    Returns (V, A) with V: (B, L, H, D) and A: (B, H, L, S) or None,
    matching StaticAttention.forward (eval-mode dropout).
    """
    B, S, H, D = values.shape
    one, Hp, L, Sp = scores_param.shape
    assert one == 1 and Hp == H and Sp == S, "scores param must match (H, ., S) of values"

    scale_val = float(scale) if scale is not None else 1.0 / sqrt(E)

    # ---------------- Phase 1: softmax once per head (batch-invariant) ----------------
    a_heads = pl.pallas_call(
        functools.partial(_softmax_kernel, scale=scale_val, mask_flag=mask_flag),
        out_shape=jax.ShapeDtypeStruct((H, L, S), jnp.float32),
        grid_spec=pltpu.PrefetchScalarGridSpec(
            num_scalar_prefetch=0,
            grid=(H,),
            in_specs=[pl.BlockSpec((1, 1, L, S), lambda h: (0, h, 0, 0))],
            out_specs=pl.BlockSpec((1, L, S), lambda h: (h, 0, 0)),
        ),
        compiler_params=pltpu.CompilerParams(
            dimension_semantics=("parallel",),
            vmem_limit_bytes=_vmem_limit(4 * L * S * 4),
        ),
    )(scores_param)

    # ---------------- Phase 2: pure A @ V matmul, grid over batch ----------------------
    values_2d = values.reshape(B, S, H * D)            # free trailing-dim collapse
    vmem_est = (2 * H * L * S + 2 * S * H * D + 2 * L * H * D) * 4

    v_out = pl.pallas_call(
        functools.partial(_av_kernel, H=H, D=D),
        out_shape=jax.ShapeDtypeStruct((B, L, H * D), jnp.float32),
        grid_spec=pltpu.PrefetchScalarGridSpec(
            num_scalar_prefetch=0,
            grid=(B,),
            in_specs=[
                pl.BlockSpec((H, L, S), lambda b: (0, 0, 0)),       # constant -> 1 DMA
                pl.BlockSpec((1, S, H * D), lambda b: (b, 0, 0)),
            ],
            out_specs=pl.BlockSpec((1, L, H * D), lambda b: (b, 0, 0)),
        ),
        compiler_params=pltpu.CompilerParams(
            dimension_semantics=("parallel",),
            vmem_limit_bytes=_vmem_limit(vmem_est),
        ),
    )(a_heads, values_2d)

    V = v_out.reshape(B, L, H, D)                       # free, no HBM transpose
    if output_attention:
        # A is identical across the batch; broadcast in the wrapper (cheap) instead of
        # writing B identical (H, L, S) copies from the kernel.
        A = jnp.broadcast_to(a_heads[None], (B, H, L, S))
    else:
        A = None
    return V, A


if __name__ == "__main__":
    # small shapes consistent with the module: n_size=(L, S), n_heads=H
    B, L, S, H, D = 2, 16, 16, 4, 8
    E = D  # head dim used for 1/sqrt(E) scaling

    key = jax.random.PRNGKey(0)
    k_scores, k_values = jax.random.split(key)

    # deterministic init of the learnable scores parameter (torch.rand -> U[0,1))
    scores_param = jax.random.uniform(k_scores, (1, H, L, S), dtype=jnp.float32)
    values = jax.random.normal(k_values, (B, S, H, D), dtype=jnp.float32)

    V, A = static_attention(values, scores_param, E=E,
                            scale=None, mask_flag=True, output_attention=False)
    V = jax.block_until_ready(V)
    assert V.shape == (B, L, H, D)
    assert A is None

    # plain-JAX reference (same math as the PyTorch forward, eval-mode dropout)
    scale_ref = 1.0 / sqrt(E)
    s_ref = jnp.broadcast_to(scores_param, (B, H, L, S))
    causal = jnp.triu(jnp.ones((L, S), dtype=bool), k=1)
    s_ref = jnp.where(causal[None, None], -jnp.inf, s_ref)
    A_ref = jax.nn.softmax(scale_ref * s_ref, axis=-1)
    V_ref = jnp.einsum('bhls,bshd->blhd', A_ref, values)
    assert np.allclose(np.asarray(V), np.asarray(V_ref), rtol=5e-3, atol=5e-3), \
        float(np.max(np.abs(np.asarray(V) - np.asarray(V_ref))))

    # also exercise the output_attention=True path once
    V2, A2 = static_attention(values, scores_param, E=E,
                              scale=None, mask_flag=True, output_attention=True)
    jax.block_until_ready(V2)
    assert A2.shape == (B, H, L, S)
    assert np.allclose(np.asarray(A2), np.asarray(A_ref), rtol=5e-3, atol=5e-3)

    print("KERNEL_OK")
</pallas_src>

<mosaic_0001>
module attributes {stable_mosaic.version = 11 : i64} {
  func.func @_av_kernel(%arg0: i32, %arg1: memref<4x16x16xf32, #tpu.memory_space<vmem>>, %arg2: memref<1x16x32xf32, #tpu.memory_space<vmem>>, %arg3: memref<1x16x32xf32, #tpu.memory_space<vmem>>) attributes {dimension_semantics = [#tpu.dimension_semantics<parallel>], iteration_bounds = array<i64: 2>, scalar_prefetch = 0 : i64, scratch_operands = 0 : i64, tpu.core_type = #tpu.core_type<tc>, window_params = [{pipeline_mode = #tpu.pipeline_mode<synchronous>, transform_indices = @transform_0, window_bounds = array<i64: 4, 16, 16>}, {transform_indices = @transform_1, window_bounds = array<i64: 1, 16, 32>}, {transform_indices = @transform_2, window_bounds = array<i64: 1, 16, 32>}]} {
    %c0 = arith.constant 0 : index
    %c0_0 = arith.constant 0 : index
    %c0_1 = arith.constant 0 : index
    %0 = vector.load %arg2[%c0, %c0_0, %c0_1] : memref<1x16x32xf32, #tpu.memory_space<vmem>>, vector<1x16x32xf32>
    %1 = vector.shape_cast %0 : vector<1x16x32xf32> to vector<16x32xf32>
    %c0_2 = arith.constant 0 : index
    %c0_3 = arith.constant 0 : index
    %c0_4 = arith.constant 0 : index
    %2 = vector.load %arg1[%c0_2, %c0_3, %c0_4] : memref<4x16x16xf32, #tpu.memory_space<vmem>>, vector<1x16x16xf32>
    %3 = vector.shape_cast %2 : vector<1x16x16xf32> to vector<16x16xf32>
    %4 = vector.extract_strided_slice %1 {offsets = [0, 0], sizes = [16, 8], strides = [1, 1]} : vector<16x32xf32> to vector<16x8xf32>
    %cst = arith.constant dense<0.000000e+00> : vector<16x8xf32>
    %5 = tpu.matmul %3, %4, %cst {dimension_numbers = #tpu.dot_dimension_numbers<[1], [0], [0], [1], [0, 0, 1, 1], [], []>} : vector<16x16xf32>, vector<16x8xf32>, vector<16x8xf32> -> vector<16x8xf32>
    %c1 = arith.constant 1 : index
    %c0_5 = arith.constant 0 : index
    %c0_6 = arith.constant 0 : index
    %6 = vector.load %arg1[%c1, %c0_5, %c0_6] : memref<4x16x16xf32, #tpu.memory_space<vmem>>, vector<1x16x16xf32>
    %7 = vector.shape_cast %6 : vector<1x16x16xf32> to vector<16x16xf32>
    %8 = vector.extract_strided_slice %1 {offsets = [0, 8], sizes = [16, 8], strides = [1, 1]} : vector<16x32xf32> to vector<16x8xf32>
    %cst_7 = arith.constant dense<0.000000e+00> : vector<16x8xf32>
    %9 = tpu.matmul %7, %8, %cst_7 {dimension_numbers = #tpu.dot_dimension_numbers<[1], [0], [0], [1], [0, 0, 1, 1], [], []>} : vector<16x16xf32>, vector<16x8xf32>, vector<16x8xf32> -> vector<16x8xf32>
    %c2 = arith.constant 2 : index
    %c0_8 = arith.constant 0 : index
    %c0_9 = arith.constant 0 : index
    %10 = vector.load %arg1[%c2, %c0_8, %c0_9] : memref<4x16x16xf32, #tpu.memory_space<vmem>>, vector<1x16x16xf32>
    %11 = vector.shape_cast %10 : vector<1x16x16xf32> to vector<16x16xf32>
    %12 = vector.extract_strided_slice %1 {offsets = [0, 16], sizes = [16, 8], strides = [1, 1]} : vector<16x32xf32> to vector<16x8xf32>
    %cst_10 = arith.constant dense<0.000000e+00> : vector<16x8xf32>
    %13 = tpu.matmul %11, %12, %cst_10 {dimension_numbers = #tpu.dot_dimension_numbers<[1], [0], [0], [1], [0, 0, 1, 1], [], []>} : vector<16x16xf32>, vector<16x8xf32>, vector<16x8xf32> -> vector<16x8xf32>
    %c3 = arith.constant 3 : index
    %c0_11 = arith.constant 0 : index
    %c0_12 = arith.constant 0 : index
    %14 = vector.load %arg1[%c3, %c0_11, %c0_12] : memref<4x16x16xf32, #tpu.memory_space<vmem>>, vector<1x16x16xf32>
    %15 = vector.shape_cast %14 : vector<1x16x16xf32> to vector<16x16xf32>
    %16 = vector.extract_strided_slice %1 {offsets = [0, 24], sizes = [16, 8], strides = [1, 1]} : vector<16x32xf32> to vector<16x8xf32>
    %cst_13 = arith.constant dense<0.000000e+00> : vector<16x8xf32>
    %17 = tpu.matmul %15, %16, %cst_13 {dimension_numbers = #tpu.dot_dimension_numbers<[1], [0], [0], [1], [0, 0, 1, 1], [], []>} : vector<16x16xf32>, vector<16x8xf32>, vector<16x8xf32> -> vector<16x8xf32>
    %18 = tpu.concatenate %5, %9, %13, %17 in 1 : vector<16x8xf32>, vector<16x8xf32>, vector<16x8xf32>, vector<16x8xf32> -> vector<16x32xf32>
    %c0_14 = arith.constant 0 : index
    %c0_15 = arith.constant 0 : index
    %c0_16 = arith.constant 0 : index
    %19 = vector.load %arg3[%c0_14, %c0_15, %c0_16] : memref<1x16x32xf32, #tpu.memory_space<vmem>>, vector<1x16x32xf32>
    %20 = vector.shape_cast %19 : vector<1x16x32xf32> to vector<16x32xf32>
    %21 = vector.shape_cast %18 : vector<16x32xf32> to vector<1x16x32xf32>
    tpu.vector_store %arg3[%c0_14, %c0_15, %c0_16], %21 {strides = array<i32>} : memref<1x16x32xf32, #tpu.memory_space<vmem>>, vector<1x16x32xf32>,
    return
  }
  func.func @transform_0(%arg0: i32) -> (i32, i32, i32) {
    %c0_i32 = arith.constant 0 : i32
    %c0_i32_0 = arith.constant 0 : i32
    %c0_i32_1 = arith.constant 0 : i32
    %c0_i32_2 = arith.constant 0 : i32
    return %c0_i32, %c0_i32_0, %c0_i32_1 : i32, i32, i32
  }
  func.func @transform_1(%arg0: i32) -> (i32, i32, i32) {
    %c0_i32 = arith.constant 0 : i32
    %c0_i32_0 = arith.constant 0 : i32
    %c0_i32_1 = arith.constant 0 : i32
    return %arg0, %c0_i32, %c0_i32_0 : i32, i32, i32
  }
  func.func @transform_2(%arg0: i32) -> (i32, i32, i32) {
    %c0_i32 = arith.constant 0 : i32
    %c0_i32_0 = arith.constant 0 : i32
    %c0_i32_1 = arith.constant 0 : i32
    return %arg0, %c0_i32, %c0_i32_0 : i32, i32, i32
  }
}

module attributes {stable_mosaic.version = 11 : i64} {
  func.func @_softmax_kernel(%arg0: i32, %arg1: memref<1x1x16x16xf32, #tpu.memory_space<vmem>>, %arg2: memref<1x16x16xf32, #tpu.memory_space<vmem>>) attributes {dimension_semantics = [#tpu.dimension_semantics<parallel>], iteration_bounds = array<i64: 4>, scalar_prefetch = 0 : i64, scratch_operands = 0 : i64, tpu.core_type = #tpu.core_type<tc>, window_params = [{transform_indices = @transform_0, window_bounds = array<i64: 1, 1, 16, 16>}, {transform_indices = @transform_1, window_bounds = array<i64: 1, 16, 16>}]} {
    %c0 = arith.constant 0 : index
    %c0_0 = arith.constant 0 : index
    %c0_1 = arith.constant 0 : index
    %c0_2 = arith.constant 0 : index
    %0 = vector.load %arg1[%c0, %c0_0, %c0_1, %c0_2] : memref<1x1x16x16xf32, #tpu.memory_space<vmem>>, vector<1x1x16x16xf32>
    %1 = vector.shape_cast %0 : vector<1x1x16x16xf32> to vector<16x16xf32>
    %cst = arith.constant 0.353553385 : f32
    %2 = vector.broadcast %cst : f32 to vector<16x16xf32>
    %3 = arith.mulf %1, %2 : vector<16x16xf32>
    %4 = tpu.iota {dimensions = array<i32: 0>} : vector<16x16xi32>
    %5 = tpu.iota {dimensions = array<i32: 1>} : vector<16x16xi32>
    %6 = arith.cmpi sgt, %5, %4 : vector<16x16xi32>
    %cst_3 = arith.constant 0xFF800000 : f32
    %7 = vector.broadcast %cst_3 : f32 to vector<16x16xf32>
    %8 = arith.select %6, %7, %3 : vector<16x16xi1>, vector<16x16xf32>
    %cst_4 = arith.constant dense<0xFF800000> : vector<16xf32>
    %9 = vector.multi_reduction <maximumf>, %8, %cst_4 [1] : vector<16x16xf32> to vector<16xf32>
    %10 = vector.shape_cast %9 : vector<16xf32> to vector<16x1xf32>
    %11 = vector.broadcast %10 : vector<16x1xf32> to vector<16x16xf32>
    %12 = arith.subf %8, %11 : vector<16x16xf32>
    %13 = math.exp %12 : vector<16x16xf32>
    %cst_5 = arith.constant dense<0.000000e+00> : vector<16xf32>
    %14 = vector.multi_reduction <add>, %13, %cst_5 [1] : vector<16x16xf32> to vector<16xf32>
    %15 = vector.shape_cast %14 : vector<16xf32> to vector<16x1xf32>
    %16 = tpu.reciprocal %15 {approx = true} : vector<16x1xf32> -> vector<16x1xf32>
    %17 = vector.broadcast %16 : vector<16x1xf32> to vector<16x16xf32>
    %18 = arith.mulf %13, %17 : vector<16x16xf32>
    %c0_6 = arith.constant 0 : index
    %c0_7 = arith.constant 0 : index
    %c0_8 = arith.constant 0 : index
    %19 = vector.load %arg2[%c0_6, %c0_7, %c0_8] : memref<1x16x16xf32, #tpu.memory_space<vmem>>, vector<1x16x16xf32>
    %20 = vector.shape_cast %19 : vector<1x16x16xf32> to vector<16x16xf32>
    %21 = vector.shape_cast %18 : vector<16x16xf32> to vector<1x16x16xf32>
    tpu.vector_store %arg2[%c0_6, %c0_7, %c0_8], %21 {strides = array<i32>} : memref<1x16x16xf32, #tpu.memory_space<vmem>>, vector<1x16x16xf32>,
    return
  }
  func.func @transform_0(%arg0: i32) -> (i32, i32, i32, i32) {
    %c0_i32 = arith.constant 0 : i32
    %c0_i32_0 = arith.constant 0 : i32
    %c0_i32_1 = arith.constant 0 : i32
    %c0_i32_2 = arith.constant 0 : i32
    return %c0_i32, %arg0, %c0_i32_0, %c0_i32_1 : i32, i32, i32, i32
  }
  func.func @transform_1(%arg0: i32) -> (i32, i32, i32) {
    %c0_i32 = arith.constant 0 : i32
    %c0_i32_0 = arith.constant 0 : i32
    %c0_i32_1 = arith.constant 0 : i32
    return %arg0, %c0_i32, %c0_i32_0 : i32, i32, i32
  }
}

</mosaic_0001>

<bundles_post_ra>
// kernel: static_attention.2
= control target key start
LH: loop header
LB: loop body
LE: loop exit
PB: predicated region body
PF: predicated region fallthrough
CT: control target
= control target key end

     0   :  { %s257_s6 = smov 0   ;;  %s287_s0 = inlined_call_operand.vmem [shape: f32[1,4,16,16], index: 0, kind: input, shape index: {}]   ;;  %s288_s1 = inlined_call_operand.vmem [shape: f32[4,16,16], index: 1, kind: output, shape index: {}]  }
   0x1 LB: > { %s210_s7 = sadd.s32 4294967295, %s245_s6   ;;  %p214_p0 = scmp.ge.s32.totalorder %s245_s6, 1  ;;  %s245_s6 = sphi %s257_s6, %s11_s6  }
   0x2   : > { %p87_p1 = scmp.lt.s32.totalorder %s245_s6, 5 }
   0x4   : > { %p88_p2 = pnand %p214_p0, %p87_p1 }
   0x5   : > { %p107_p3 = scmp.lt.s32.totalorder (!%p88_p2), %s210_s7, 3 }
   0x6   : > { %91 = sbr.rel (%p88_p2) target bundleno = 335 (0x14f), region = 24 }
   0xb   : > { %v121_v0 = vlaneseq  ;;  %s290_s7 = smov (!%p107_p3, %s210_s7), 3  ;;  %vm130_vm2 = vcmask 130048  }
   0xc   : > { %s221_s8 = sshll.u32 %s290_s7, 4 }
   0xd   : > { %v122_v1 = vshrl.u32 %v121_v0, 7  ;;  %v125_v2 = vand.u32 127, %v121_v0  ;;  %s111_s11 = scalar_lea.vmem %s287_s0, %s221_s8  ;;  %s116_s14 = scalar_lea.vmem %s288_s1, %s221_s8 }
   0xe   : > { %v117_v4 = vld [vmem:[%s111_s11] sm:$0xff]  ;;  %v118_v5 = vld [vmem:[%s111_s11 + $0x8] sm:$0xff] }
   0xf   : > { %v123_v3 = vadd.s32 8, %v122_v1  ;;  %vm126_vm0 = vcmp.gt.s32.totalorder %v125_v2, %v122_v1  ;;  %v119_v6 = vmul.f32 0.35355338, %v117_v4  ;;  %v120_v7 = vmul.f32 0.35355338, %v118_v5 }
  0x11   : > { %vm127_vm1 = vcmp.gt.s32.totalorder %v125_v2, %v123_v3  ;;  %v128_v8 = vsel %vm126_vm0, -inf, %v119_v6 }
  0x12   : > { %v129_v9 = vsel %vm127_vm1, -inf, %v120_v7  ;;  %v131_v10 = vsel %vm130_vm2, %v128_v8, -inf }
  0x13   : > { %132 = vmax.xlane.f32.xlu0 %v131_v10  ;;  %v134_v11 = vsel %vm130_vm2, %v129_v9, -inf }
  0x17   : > { %135 = vmax.xlane.f32.xlu0 %v134_v11 }
  0x9c   : > { %v133_v12 = vpop.xlane.xlu0 %132 }
  0x9d   : > { %v137_v13 = vsub.f32 %v128_v8, %v133_v12 }
  0x9f   : > { %v139_v14 = vmul.f32 1.442695, %v137_v13 }
  0xa0   : > { %v136_v15 = vpop.xlane.xlu0 %135 }
  0xa1   : > { %231 = vpow2.f32 %v139_v14  ;;  %v138_v16 = vsub.f32 %v129_v9, %v136_v15 }
  0xa3   : > { %v141_v17 = vmul.f32 1.442695, %v138_v16 }
  0xa5   : > { %233 = vpow2.f32 %v141_v17 }
  0xae   : > { %v232_v18 = vpop.eup %231 }
  0xaf   : > { %v143_v19 = vsel %vm130_vm2, %v232_v18, 0.0 }
  0xb0   : > { %144 = vadd.xlane.f32.xlu1 %v143_v19 }
  0xb2   : > { %v234_v20 = vpop.eup %233 }
  0xb3   : > { %v146_v21 = vsel %vm130_vm2, %v234_v20, 0.0 }
  0xb4   : > { %147 = vadd.xlane.f32.xlu1 %v146_v21 }
 0x139   : > { %v145_v22 = vpop.xlane.xlu1 %144 }
 0x13a   : > { %235 = vrcp.f32 %v145_v22 }
 0x13d   : > { %v148_v23 = vpop.xlane.xlu1 %147 }
 0x13e   : > { %237 = vrcp.f32 %v148_v23 }
 0x147   : > { %v236_v24 = vpop.eup %235 }
 0x148   : > { %v151_v25 = vmul.f32 %v236_v24, %v232_v18 }
 0x14a   : > { %153 = vst.msk [vmem:[%s116_s14] sm:$0xff] %vm130_vm2, %v151_v25 }
 0x14b   : > { %v238_v26 = vpop.eup %237 }
 0x14c   : > { %v152_v27 = vmul.f32 %v238_v26, %v234_v20 }
 0x14e   : > { %154 = vst.msk [vmem:[%s116_s14 + $0x8] sm:$0xff] %vm130_vm2, %v152_v27 }
 0x14f PF: > { %s11_s6 = sadd.s32 1, %s245_s6  }
 0x150   : > { %p8_p4 = scmp.ge.s32.totalorder %s11_s6, 6  }
 0x152   :  { %10 = sbr.rel (!%p8_p4) target bundleno = 1 (0x1), region = 54 }

// kernel: static_attention.3
= control target key start
LH: loop header
LB: loop body
LE: loop exit
PB: predicated region body
PF: predicated region fallthrough
CT: control target
= control target key end

     0   :  { %s706_s9 = smov 0   ;;  %s764_s0 = inlined_call_operand.vmem [shape: f32[4,16,16], index: 0, kind: input, shape index: {}]   ;;  %s765_s1 = inlined_call_operand.vmem [shape: f32[2,16,32], index: 1, kind: input, shape index: {}]   ;;  %s766_s2 = inlined_call_operand.vmem [shape: f32[2,16,32], index: 2, kind: output, shape index: {}]  }
   0x1 LB: > { %s592_s10 = sadd.s32 4294967295, %s683_s9   ;;  %p596_p0 = scmp.ge.s32.totalorder %s683_s9, 1  ;;  %s683_s9 = sphi %s706_s9, %s12_s9  }
   0x2   : > { %p112_p1 = scmp.lt.s32.totalorder %s683_s9, 3 }
   0x4   : > { %p113_p2 = pnand %p596_p0, %p112_p1 }
   0x5   : > { %p134_p3 = scmp.lt.s32.totalorder (!%p113_p2), %s592_s10, 1  ;;  %s685_s19 = smov (!%p113_p2), 120  }
   0x6   : > { %116 = sbr.rel (%p113_p2) target bundleno = 456 (0x1c8), region = 28  ;;  %s686_s20 = smov (!%p113_p2), 112  }
   0x7   : > { %s687_s23 = smov (!%p113_p2), 104   ;;  %s688_s6 = smov (!%p113_p2), 8  }
   0x8   : > { %s689_s7 = smov (!%p113_p2), 16   ;;  %s690_s8 = smov (!%p113_p2), 24  }
   0xb   : > { %v146_v0 = vld [vmem:[%s764_s0] sm:$0xff]  ;;  %vm148_vm0 = vcmask 130048   ;;  %v603_v1 = vld [vmem:[%s764_s0 + $0x10] sm:$0xff]  ;;  %s768_s10 = smov (!%p134_p3, %s592_s10), 1  ;;  %v147_v4 = vld [vmem:[%s764_s0 + $0x8] sm:$0xff]  ;;  %vm526_vm1 = vcmask 64512  }
   0xc   : > { %639 = vmatprep.mubr.msk.f32.mxu0 %vm148_vm0, %v146_v0  ;;  %646 = vmatprep.mubr.msk.f32.mxu1 %vm148_vm0, %v603_v1  ;;  %s617_s15 = sshll.u32 %s768_s10, 4  ;;  %v607_v5 = vld [vmem:[%s764_s0 + $0x20] sm:$0xff]  ;;  %v604_v10 = vld [vmem:[%s764_s0 + $0x18] sm:$0xff]  ;;  %v611_v11 = vld [vmem:[%s764_s0 + $0x30] sm:$0xff]  ;;  %vm531_vm2 = vcmask 195584   ;;  %vm534_vm3 = vcmask 261120  }
   0xd   : > { %s138_s18 = scalar_lea.vmem %s765_s1, %s617_s15  ;;  %v608_v14 = vld [vmem:[%s764_s0 + $0x28] sm:$0xff]  ;;  %v612_v15 = vld [vmem:[%s764_s0 + $0x38] sm:$0xff]  ;;  %s143_s13 = scalar_lea.vmem %s766_s2, %s617_s15 }
   0xe   : > { %v145_v2 = vld [vmem:[%s138_s18 + $0x8] sm:$0xff]  ;;  %v144_v3 = vld [vmem:[%s138_s18] sm:$0xff] }
   0xf   : > { %237 = vrot.lane.b32.xlu0 %v145_v2, %s685_s19  ;;  %327 = vrot.lane.b32.xlu1 %v145_v2, %s686_s20 }
  0x10   : > { %635 = vmatprep.subr.mxu0 %v145_v2 }
  0x11   : > { %636 = vmatpush3.msra.mxu0 %v145_v2 }
  0x12   : > { %637 = vmatprep.subr.mxu0 %v144_v3 }
  0x13   : > { %235 = vrot.lane.b32.xlu0 %v144_v3, %s685_s19  ;;  %417 = vrot.lane.b32.xlu1 %v145_v2, %s687_s23 }
  0x14   : > { %638 = vmatpush3.msra.mxu0 %v144_v3 }
  0x15   : > { %640 = vmatmul.mubr.msk.f32.vlgmr.msra.gmra.mxu0 %vm148_vm0, %v147_v4 }
  0x16   : > { %653 = vmatprep.mubr.msk.f32.mxu0 %vm148_vm0, %v607_v5 }
  0x17   : > { %325 = vrot.lane.b32.xlu0 %v144_v3, %s686_s20  ;;  %415 = vrot.lane.b32.xlu1 %v144_v3, %s687_s23 }
  0x81   : > { %v238_v6 = vpop.permute.xlu0 %237  ;;  %v328_v7 = vpop.permute.xlu1 %327 }
  0x82   : > { %642 = vmatprep.subr.mxu1 %v238_v6  ;;  %649 = vmatprep.subr.mxu0 %v328_v7 }
  0x83   : > { %643 = vmatpush3.msra.mxu1 %v238_v6  ;;  %650 = vmatpush3.msra.mxu0 %v328_v7 }
  0x85   : > { %v236_v8 = vpop.permute.xlu0 %235  ;;  %v418_v9 = vpop.permute.xlu1 %417 }
  0x86   : > { %644 = vmatprep.subr.mxu1 %v236_v8 }
  0x87   : > { %645 = vmatpush3.msra.mxu1 %v236_v8 }
  0x88   : > { %647 = vmatmul.mubr.msk.f32.vlgmr.msra.gmra.mxu1 %vm148_vm0, %v604_v10  ;;  %656 = vmatprep.subr.mxu1 %v418_v9 }
  0x89   : > { %v326_v12 = vpop.permute.xlu0 %325  ;;  %657 = vmatpush3.msra.mxu1 %v418_v9  ;;  %v416_v13 = vpop.permute.xlu1 %415  ;;  %660 = vmatprep.mubr.msk.f32.mxu1 %vm148_vm0, %v611_v11 }
  0x8a   : > { %651 = vmatprep.subr.mxu0 %v326_v12  ;;  %658 = vmatprep.subr.mxu1 %v416_v13 }
  0x8b   : > { %652 = vmatpush3.msra.mxu0 %v326_v12  ;;  %659 = vmatpush3.msra.mxu1 %v416_v13 }
  0x8c   : > { %654 = vmatmul.mubr.msk.f32.vlgmr.msra.gmra.mxu0 %vm148_vm0, %v608_v14  ;;  %661 = vmatmul.mubr.msk.f32.vlgmr.msra.gmra.mxu1 %vm148_vm0, %v612_v15 }
  0xd5   : > { %v641_v16 = vpop.f32.mrf.mxu0 }
  0xd7   : > { %v221_v18 = vpop.f32.mrf.mxu0 }
 0x148   : > { %v648_v17 = vpop.f32.mrf.mxu1 }
 0x149   : > { %506 = vrot.lane.b32.xlu1 %v648_v17, %s688_s6 }
 0x14a   : > { %v313_v19 = vpop.f32.mrf.mxu1 }
 0x14b   : > { %504 = vrot.lane.b32.xlu0 %v313_v19, %s688_s6 }
 0x14c   : > { %v655_v20 = vpop.f32.mrf.mxu0  ;;  %v662_v22 = vpop.f32.mrf.mxu1 }
 0x14d   : > { %514 = vrot.lane.b32.xlu1 %v655_v20, %s689_s7 }
 0x14e   : > { %v403_v21 = vpop.f32.mrf.mxu0  ;;  %v493_v23 = vpop.f32.mrf.mxu1 }
 0x14f   : > { %512 = vrot.lane.b32.xlu0 %v403_v21, %s689_s7 }
 0x151   : > { %522 = vrot.lane.b32.xlu1 %v662_v22, %s690_s8 }
 0x153   : > { %520 = vrot.lane.b32.xlu0 %v493_v23, %s690_s8 }
 0x1bb   : > { %v507_v24 = vpop.permute.xlu1 %506 }
 0x1bc   : > { %v528_v28 = vsel %vm526_vm1, %v641_v16, %v507_v24 }
 0x1bd   : > { %v505_v25 = vpop.permute.xlu0 %504 }
 0x1be   : > { %v527_v31 = vsel %vm526_vm1, %v221_v18, %v505_v25 }
 0x1bf   : > { %v515_v26 = vpop.permute.xlu1 %514 }
 0x1c0   : > { %v530_v29 = vsel %vm148_vm0, %v528_v28, %v515_v26 }
 0x1c1   : > { %v513_v27 = vpop.permute.xlu0 %512 }
 0x1c2   : > { %v529_v33 = vsel %vm148_vm0, %v527_v31, %v513_v27 }
 0x1c3   : > { %v523_v30 = vpop.permute.xlu1 %522 }
 0x1c4   : > { %v533_v32 = vsel %vm531_vm2, %v530_v29, %v523_v30 }
 0x1c5   : > { %536 = vst.msk [vmem:[%s143_s13 + $0x8] sm:$0xff] %vm534_vm3, %v533_v32  ;;  %v521_v34 = vpop.permute.xlu0 %520 }
 0x1c6   : > { %v532_v35 = vsel %vm531_vm2, %v529_v33, %v521_v34 }
 0x1c7   : > { %535 = vst.msk [vmem:[%s143_s13] sm:$0xff] %vm534_vm3, %v532_v35 }
 0x1c8 PF: > { %s12_s9 = sadd.s32 1, %s683_s9  }
 0x1c9   : > { %p9_p4 = scmp.ge.s32.totalorder %s12_s9, 4  }
 0x1cb   :  { %11 = sbr.rel (!%p9_p4) target bundleno = 1 (0x1), region = 61 }

</bundles_post_ra>
